<compile_context>
chip_gen: v5e
topology: v5e:2x2
jax: 0.10.0
libtpu: 0.0.40
codegen_flags: <defaults>
</compile_context>

<pallas_src>
import functools

import jax
import jax.numpy as jnp
from jax import lax
from jax.experimental import pallas as pl
from jax.experimental.pallas import tpu as pltpu


def _round_up(x, m):
    return ((x + m - 1) // m) * m


def _ac_net_kernel(x_ref, p1_ref, ph_ref, out_ref, *, n_states, n_hidden, n_actions):
    p1 = p1_ref[...]                      # [n_states+1, H]   (last row = fc1 bias)
    ph = ph_ref[...]                      # [H+1, OUT_W]      (last row = head bias)
    x = x_ref[...]                        # [TB, n_states]

    # ---- fc1 + ReLU --------------------------------------------------------
    h = jnp.dot(x, p1[:n_states, :], preferred_element_type=jnp.float32)
    h = jnp.maximum(h + p1[n_states:, :], 0.0)                 # [TB, H]

    # ---- fused action/value heads (one MXU push) ---------------------------
    logits = jnp.dot(h, ph[:n_hidden, :], preferred_element_type=jnp.float32)
    logits = logits + ph[n_hidden:, :]                         # [TB, OUT_W]

    # columns [0, n_actions) = action logits, column n_actions = state value,
    # columns > n_actions are zero padding (lane-density only).
    col = lax.broadcasted_iota(jnp.int32, logits.shape, 1)
    is_action = col < n_actions
    is_value = col == n_actions

    # softmax restricted to the action columns (exclude value / padding)
    masked = jnp.where(is_action, logits, jnp.float32(-1e30))
    m = jnp.max(masked, axis=-1, keepdims=True)
    e = jnp.where(is_action, jnp.exp(masked - m), 0.0)
    denom = jnp.sum(e, axis=-1, keepdims=True)
    probs = e / denom                      # exact reciprocal -> rows sum to 1

    out = jnp.where(is_action, probs, jnp.where(is_value, logits, 0.0))
    out_ref[...] = out.astype(out_ref.dtype)                   # lane-dense store


def ac_net_forward(x, w1, b1, wa, ba, wv, bv, *, tb=256):
    """ac_net forward: returns (softmax(action_logits, -1), state_value).

    x: [B, n_states] f32. Weights are [in, out] (transposed vs torch.nn.Linear).
    """
    B, n_states = x.shape
    n_hidden = w1.shape[1]
    n_actions = wa.shape[1]
    out_w = _round_up(n_actions + 1, 128)          # lane-dense output width

    # ---- pack parameters host-side: 6 tiny arrays -> 2 input DMAs ----------
    packed1 = jnp.concatenate([w1, b1], axis=0)                  # [n_states+1, H]
    heads_w = jnp.concatenate([wa, wv], axis=1)                  # [H, n_actions+1]
    heads_b = jnp.concatenate([ba, bv], axis=1)                  # [1, n_actions+1]
    packed_h = jnp.concatenate([heads_w, heads_b], axis=0)       # [H+1, n_actions+1]
    packed_h = jnp.pad(packed_h, ((0, 0), (0, out_w - (n_actions + 1))))

    # ---- batch tiling (grid amortizes fixed overhead; axis is "parallel") ---
    TB = min(tb, _round_up(B, 8))
    B_pad = _round_up(B, TB)
    if B_pad != B:
        x = jnp.pad(x, ((0, B_pad - B), (0, 0)))
    grid = (B_pad // TB,)

    kernel = functools.partial(
        _ac_net_kernel,
        n_states=n_states, n_hidden=n_hidden, n_actions=n_actions)

    out = pl.pallas_call(
        kernel,
        grid=grid,
        in_specs=[
            pl.BlockSpec((TB, n_states), lambda i: (i, 0)),
            # constant index_maps -> weights DMA'd once, resident across steps
            pl.BlockSpec((n_states + 1, n_hidden), lambda i: (0, 0)),
            pl.BlockSpec((n_hidden + 1, out_w), lambda i: (0, 0)),
        ],
        out_specs=pl.BlockSpec((TB, out_w), lambda i: (i, 0)),
        out_shape=jax.ShapeDtypeStruct((B_pad, out_w), jnp.float32),
        compiler_params=pltpu.CompilerParams(
            dimension_semantics=("parallel",)),    # shards over 2 TCs on v7x
    )(x, packed1, packed_h)

    probs = out[:B, :n_actions]
    value = out[:B, n_actions:n_actions + 1]
    return probs, value


def init_params(key, n_states, n_actions, n_hidden=32):
    """Deterministic synthetic init mirroring nn.Linear shapes.

    PyTorch stores Linear weights as [out, in]; we store transposed [in, out]
    so the kernel performs x @ W + b directly.
    """
    k1, k2, k3, k4, k5, k6 = jax.random.split(key, 6)
    scale = 0.1
    w1 = scale * jax.random.normal(k1, (n_states, n_hidden), jnp.float32)
    b1 = scale * jax.random.normal(k2, (1, n_hidden), jnp.float32)
    wa = scale * jax.random.normal(k3, (n_hidden, n_actions), jnp.float32)
    ba = scale * jax.random.normal(k4, (1, n_actions), jnp.float32)
    wv = scale * jax.random.normal(k5, (n_hidden, 1), jnp.float32)
    bv = scale * jax.random.normal(k6, (1, 1), jnp.float32)
    return w1, b1, wa, ba, wv, bv


def reference_forward(x, w1, b1, wa, ba, wv, bv):
    hp = jax.lax.Precision.HIGHEST
    h = jnp.maximum(jnp.dot(x, w1, precision=hp) + b1, 0.0)
    probs = jax.nn.softmax(jnp.dot(h, wa, precision=hp) + ba, axis=-1)
    value = jnp.dot(h, wv, precision=hp) + bv
    return probs, value


if __name__ == "__main__":
    # small shapes consistent with the module: batch=2, n_states=4,
    # n_actions=4, n_hidden=32 (default)
    B, n_states, n_actions, n_hidden = 2, 4, 4, 32

    key = jax.random.PRNGKey(0)
    kx, kp = jax.random.split(key)
    x = jax.random.normal(kx, (B, n_states), jnp.float32)
    params = init_params(kp, n_states, n_actions, n_hidden)

    probs, value = ac_net_forward(x, *params)
    jax.block_until_ready((probs, value))

    # correctness check against pure-JAX reference
    ref_probs, ref_value = reference_forward(x, *params)
    assert probs.shape == (B, n_actions) and value.shape == (B, 1)
    assert jnp.allclose(probs, ref_probs, atol=1e-4), "softmax(action) mismatch"
    assert jnp.allclose(value, ref_value, atol=1e-4), "state value mismatch"
    assert jnp.allclose(jnp.sum(probs, axis=-1), 1.0, atol=1e-4)

    print("KERNEL_OK")
</pallas_src>

<mosaic_0001>
module attributes {stable_mosaic.version = 11 : i64} {
  func.func @_ac_net_kernel(%arg0: i32, %arg1: memref<8x4xf32, #tpu.memory_space<vmem>>, %arg2: memref<5x32xf32, #tpu.memory_space<vmem>>, %arg3: memref<33x128xf32, #tpu.memory_space<vmem>>, %arg4: memref<8x128xf32, #tpu.memory_space<vmem>>) attributes {dimension_semantics = [#tpu.dimension_semantics<parallel>], iteration_bounds = array<i64: 1>, scalar_prefetch = 0 : i64, scratch_operands = 0 : i64, tpu.core_type = #tpu.core_type<tc>, window_params = [{transform_indices = @transform_0, window_bounds = array<i64: 8, 4>}, {pipeline_mode = #tpu.pipeline_mode<synchronous>, transform_indices = @transform_1, window_bounds = array<i64: 5, 32>}, {pipeline_mode = #tpu.pipeline_mode<synchronous>, transform_indices = @transform_2, window_bounds = array<i64: 33, 128>}, {transform_indices = @transform_3, window_bounds = array<i64: 8, 128>}]} {
    %c0 = arith.constant 0 : index
    %c0_0 = arith.constant 0 : index
    %0 = vector.load %arg2[%c0, %c0_0] : memref<5x32xf32, #tpu.memory_space<vmem>>, vector<5x32xf32>
    %c0_1 = arith.constant 0 : index
    %c0_2 = arith.constant 0 : index
    %1 = vector.load %arg3[%c0_1, %c0_2] : memref<33x128xf32, #tpu.memory_space<vmem>>, vector<33x128xf32>
    %c0_3 = arith.constant 0 : index
    %c0_4 = arith.constant 0 : index
    %2 = vector.load %arg1[%c0_3, %c0_4] : memref<8x4xf32, #tpu.memory_space<vmem>>, vector<8x4xf32>
    %3 = vector.extract_strided_slice %0 {offsets = [0, 0], sizes = [4, 32], strides = [1, 1]} : vector<5x32xf32> to vector<4x32xf32>
    %cst = arith.constant dense<0.000000e+00> : vector<8x32xf32>
    %4 = tpu.matmul %2, %3, %cst {dimension_numbers = #tpu.dot_dimension_numbers<[1], [0], [0], [1], [0, 0, 1, 1], [], []>} : vector<8x4xf32>, vector<4x32xf32>, vector<8x32xf32> -> vector<8x32xf32>
    %5 = vector.extract_strided_slice %0 {offsets = [4, 0], sizes = [1, 32], strides = [1, 1]} : vector<5x32xf32> to vector<1x32xf32>
    %6 = vector.broadcast %5 : vector<1x32xf32> to vector<8x32xf32>
    %7 = arith.addf %4, %6 : vector<8x32xf32>
    %cst_5 = arith.constant 0.000000e+00 : f32
    %8 = vector.broadcast %cst_5 : f32 to vector<8x32xf32>
    %9 = arith.maximumf %7, %8 : vector<8x32xf32>
    %10 = vector.extract_strided_slice %1 {offsets = [0, 0], sizes = [32, 128], strides = [1, 1]} : vector<33x128xf32> to vector<32x128xf32>
    %cst_6 = arith.constant dense<0.000000e+00> : vector<8x128xf32>
    %11 = tpu.matmul %9, %10, %cst_6 {dimension_numbers = #tpu.dot_dimension_numbers<[1], [0], [0], [1], [0, 0, 1, 1], [], []>} : vector<8x32xf32>, vector<32x128xf32>, vector<8x128xf32> -> vector<8x128xf32>
    %12 = vector.extract_strided_slice %1 {offsets = [32, 0], sizes = [1, 128], strides = [1, 1]} : vector<33x128xf32> to vector<1x128xf32>
    %13 = vector.broadcast %12 : vector<1x128xf32> to vector<8x128xf32>
    %14 = arith.addf %11, %13 : vector<8x128xf32>
    %15 = tpu.iota {dimensions = array<i32: 1>} : vector<8x128xi32>
    %c4_i32 = arith.constant 4 : i32
    %16 = vector.broadcast %c4_i32 : i32 to vector<8x128xi32>
    %17 = arith.cmpi slt, %15, %16 : vector<8x128xi32>
    %c4_i32_7 = arith.constant 4 : i32
    %18 = vector.broadcast %c4_i32_7 : i32 to vector<8x128xi32>
    %19 = arith.cmpi eq, %15, %18 : vector<8x128xi32>
    %cst_8 = arith.constant -1.000000e+30 : f32
    %20 = vector.broadcast %cst_8 : f32 to vector<8x128xf32>
    %21 = arith.select %17, %14, %20 : vector<8x128xi1>, vector<8x128xf32>
    %cst_9 = arith.constant dense<0xFF800000> : vector<8xf32>
    %22 = vector.multi_reduction <maximumf>, %21, %cst_9 [1] : vector<8x128xf32> to vector<8xf32>
    %23 = vector.shape_cast %22 : vector<8xf32> to vector<8x1xf32>
    %24 = vector.broadcast %23 : vector<8x1xf32> to vector<8x128xf32>
    %25 = arith.subf %21, %24 : vector<8x128xf32>
    %26 = math.exp %25 : vector<8x128xf32>
    %cst_10 = arith.constant 0.000000e+00 : f32
    %27 = vector.broadcast %cst_10 : f32 to vector<8x128xf32>
    %28 = arith.select %17, %26, %27 : vector<8x128xi1>, vector<8x128xf32>
    %cst_11 = arith.constant dense<0.000000e+00> : vector<8xf32>
    %29 = vector.multi_reduction <add>, %28, %cst_11 [1] : vector<8x128xf32> to vector<8xf32>
    %30 = vector.shape_cast %29 : vector<8xf32> to vector<8x1xf32>
    %31 = vector.broadcast %30 : vector<8x1xf32> to vector<8x128xf32>
    %32 = arith.divf %28, %31 : vector<8x128xf32>
    %cst_12 = arith.constant 0.000000e+00 : f32
    %33 = vector.broadcast %cst_12 : f32 to vector<8x128xf32>
    %34 = arith.select %19, %14, %33 : vector<8x128xi1>, vector<8x128xf32>
    %35 = arith.select %17, %32, %34 : vector<8x128xi1>, vector<8x128xf32>
    %c0_13 = arith.constant 0 : index
    %c0_14 = arith.constant 0 : index
    %36 = vector.load %arg4[%c0_13, %c0_14] : memref<8x128xf32, #tpu.memory_space<vmem>>, vector<8x128xf32>
    tpu.vector_store %arg4[%c0_13, %c0_14], %35 {strides = array<i32>} : memref<8x128xf32, #tpu.memory_space<vmem>>, vector<8x128xf32>,
    return
  }
  func.func @transform_0(%arg0: i32) -> (i32, i32) {
    %c0_i32 = arith.constant 0 : i32
    %c0_i32_0 = arith.constant 0 : i32
    return %arg0, %c0_i32 : i32, i32
  }
  func.func @transform_1(%arg0: i32) -> (i32, i32) {
    %c0_i32 = arith.constant 0 : i32
    %c0_i32_0 = arith.constant 0 : i32
    %c0_i32_1 = arith.constant 0 : i32
    return %c0_i32, %c0_i32_0 : i32, i32
  }
  func.func @transform_2(%arg0: i32) -> (i32, i32) {
    %c0_i32 = arith.constant 0 : i32
    %c0_i32_0 = arith.constant 0 : i32
    %c0_i32_1 = arith.constant 0 : i32
    return %c0_i32, %c0_i32_0 : i32, i32
  }
  func.func @transform_3(%arg0: i32) -> (i32, i32) {
    %c0_i32 = arith.constant 0 : i32
    %c0_i32_0 = arith.constant 0 : i32
    return %arg0, %c0_i32 : i32, i32
  }
}

</mosaic_0001>

<bundles_post_ra>
// kernel: tpu_custom_call.1
= control target key start
LH: loop header
LB: loop body
LE: loop exit
PB: predicated region body
PF: predicated region fallthrough
CT: control target
= control target key end

     0   :  { %8 = vsyncpa [#allocation3], 0  ;;  %s244_s0 = inlined_call_operand.vmem [shape: f32[8,4], index: 0, kind: input, shape index: {}]   ;;  %s245_s1 = inlined_call_operand.vmem [shape: f32[5,32], index: 1, kind: input, shape index: {}]   ;;  %s246_s2 = inlined_call_operand.hbm [shape: f32[33,128], index: 2, kind: input, shape index: {}]   ;;  %s247_s3 = inlined_call_operand.hbm [shape: f32[8,128], index: 3, kind: output, shape index: {}]  }
   0x1   :  { %9 = vsyncpa [#allocation4], 0  ;;  %s18_s14 = sshll.u32 %s246_s2, 4  ;;  %s205_s15 = smov [#allocation2]   ;;  %s19_s14 = int_to_ptr.hbm [resolvable:$true] %s18_s14 }
   0x2   :  { %s20_s16 = sshll.u32 %s205_s15, 4  ;;  %s206_s17 = smov 128   ;;  %s21_s16 = int_to_ptr.vmem [resolvable:$true] %s20_s16 }
   0x3   :  { %s207_s18 = smov 8  }
   0x4   :  { %26 = dma.hbm_to_vmem [thread:$0]  %s19_s14, 640, %s21_s16, [#allocation3], %s206_s17, %s206_s17, %s207_s18  }
   0x5   :  { %201 = dma.done.wait [#allocation3], 640  }
   0x6   :  { %202 = vsyncadd [#allocation3], 4294966656  ;;  %vm43_vm0 = vcmask 1043456   ;;  %vm39_vm1 = vcmask 31744   ;;  %v31_v0 = vld [vmem:[%s245_s1] sm:$0x1f]  ;;  %v93_v10 = vlaneseq }
   0x7   :  { %v37_v1 = vld [vmem:[%s244_s0] sm:$0xff]  ;;  %v35_v2 = vld [vmem:[#allocation2 + $0x18] sm:$0xff]  ;;  %141 = vmatpush.msk.msra.mxu0 %vm43_vm0, %v31_v0  ;;  %v34_v3 = vld [vmem:[#allocation2 + $0x10] sm:$0xff]  ;;  %v38_v6 = vperm.slane %v31_v0, 4  ;;  %vm69_vm2 = vcmask 261120   ;;  %s208_s0 = smov [#allocation5]  }
   0x8   :  { %85 = vmatpush.msra.mxu1 %v35_v2  ;;  %142 = vmatmul.msk.f32.vlgmr.msra.gmra.mxu0 %vm39_vm1, %v37_v1  ;;  %v33_v4 = vld [vmem:[#allocation2 + $0x8] sm:$0xff]  ;;  %v32_v5 = vld [vmem:[#allocation2] sm:$0xff]  ;;  %v94_v11 = vand.u32 127, %v93_v10  ;;  %s129_s1 = sshll.u32 %s208_s0, 4  ;;  %s131_s24 = sshll.u32 %s247_s3, 4  ;;  %s130_s1 = int_to_ptr.vmem [resolvable:$true] %s129_s1  ;;  %s132_s24 = int_to_ptr.hbm [resolvable:$true] %s131_s24 }
   0x9   :  { %v148_v12 = vld [vmem:[#allocation2 + $0x20] ss:$0 sm:$0xff] }
   0xa   :  { %86 = vmatpush.msra.mxu1 %v34_v3  ;;  %vm96_vm3 = vcmp.eq.s32.totalorder %v94_v11, 4  ;;  %vm95_vm4 = vcmp.lt.s32.totalorder %v94_v11, 4 }
   0xc   :  { %87 = vmatpush.msra.mxu1 %v33_v4 }
   0xe   :  { %88 = vmatpush.msra.mxu1 %v32_v5 }
  0x85   :  { %v64_v7 = vpop.f32.mrf.mxu0 }
  0x86   :  { %v65_v8 = vadd.f32 %v64_v7, %v38_v6 }
  0x88   :  { %v67_v9 = vmax.f32 %v65_v8, 0.0 }
  0x8a   :  { %143 = vmatmul.msk.f32.vlgmr.msra.gmra.mxu1 %vm69_vm2, %v67_v9 }
 0x107   :  { %v90_v13 = vpop.f32.mrf.mxu1 }
 0x108   :  { %v91_v14 = vadd.f32 %v148_v12, %v90_v13 }
 0x10a   :  { %v121_v15 = vsel %vm96_vm3, %v91_v14, 0.0  ;;  %v97_v16 = vsel %vm95_vm4, %v91_v14, -1e+30 }
 0x10b   :  { %98 = vmax.xlane.f32.xlu0 %v97_v16 }
 0x17e   :  { %v99_v17 = vpop.xlane.xlu0 %98 }
 0x17f   :  { %v100_v18 = vsub.f32 %v97_v16, %v99_v17 }
 0x181   :  { %v101_v19 = vmul.f32 1.442695, %v100_v18 }
 0x183   :  { %149 = vpow2.f32 %v101_v19 }
 0x189   :  { %v150_v20 = vpop.eup %149 }
 0x18a   :  { %v103_v21 = vsel %vm95_vm4, %v150_v20, 0.0 }
 0x18b   :  { %104 = vadd.xlane.f32.xlu0 %v103_v21 }
 0x1fe   :  { %v105_v22 = vpop.xlane.xlu0 %104 }
 0x1ff   :  { %151 = vrcp.f32 %v105_v22  ;;  %v117_v26 = vand.u32 2147483648, %v105_v22  ;;  %v115_v28 = vand.u32 2147483647, %v105_v22  ;;  %vm111_vm6 = vweird.f32 %v105_v22 }
 0x201   :  { %v118_v30 = vor.u32 1.1754944e-38, %v117_v26  ;;  %vm116_vm8 = vcmp.eq.f32.partialorder %v115_v28, 8.507059e+37 }
 0x205   :  { %v152_v23 = vpop.eup %151 }
 0x206   :  { %v107_v24 = vmul.f32 %v152_v23, %v105_v22  ;;  %vm112_vm5 = vweird.f32 %v152_v23 }
 0x207   :  { %vm113_vm7 = vmor %vm111_vm6, %vm112_vm5 }
 0x208   :  { %v108_v25 = vsub.f32 1.0, %v107_v24 }
 0x20a   :  { %v109_v27 = vmul.f32 %v152_v23, %v108_v25 }
 0x20c   :  { %v110_v29 = vadd.f32 %v152_v23, %v109_v27 }
 0x20e   :  { %v114_v31 = vsel %vm113_vm7, %v152_v23, %v110_v29 }
 0x20f   :  { %v119_v32 = vsel %vm116_vm8, %v118_v30, %v114_v31 }
 0x210   :  { %v120_v33 = vmul.f32 %v119_v32, %v103_v21 }
 0x212   :  { %v122_v34 = vsel %vm95_vm4, %v120_v33, %v121_v15 }
 0x213   :  { %123 = vst [vmem:[#allocation5] sm:$0xff] %v122_v34 }
 0x214   :  { %134 = dma.vmem_to_hbm [thread:$0]  %s130_s1, 128, %s132_s24, [#allocation4]  }
 0x215   :  { %203 = dma.done.wait [#allocation4], 128  }
 0x216   :  { %204 = vsyncadd [#allocation4], 4294967168 }
 0x217   :  { %139 = vsyncpa [#allocation3], 1 }
 0x218   :  { %140 = vsyncpa [#allocation4], 1 }

</bundles_post_ra>
